<compile_context>
chip_gen: v7x
topology: tpu7x:2x2x1
jax: 0.10.0
libtpu: 0.0.40
codegen_flags: <defaults>
</compile_context>

<pallas_src>
import functools

import jax
import jax.numpy as jnp
from jax import lax
from jax.experimental import pallas as pl
from jax.experimental.pallas import tpu as pltpu

_LANES = 128
_NUM_CORES = 2   # v7x has 2 TensorCores; a 2-long outer loop is harmless on 1-TC chips.


def _sublane_multiple(dtype):
    itemsize = jnp.dtype(dtype).itemsize
    return max(8, 8 * (4 // max(1, itemsize)))   # 8 (f32), 16 (bf16), 32 (8-bit)


def _minmax_kernel(params_ref, rows_ref, x_ref, rmin_ref, rmax_ref):
    """Pass 1: per-core running lane-resident min/max of raw_weights."""
    a = params_ref[0]
    b = params_ref[1]
    rows_total = rows_ref[0]

    @pl.when(pl.program_id(1) == 0)
    def _init():
        rmin_ref[...] = jnp.full(rmin_ref.shape, jnp.inf, jnp.float32)
        rmax_ref[...] = jnp.full(rmax_ref.shape, -jnp.inf, jnp.float32)

    tr = x_ref.shape[0]
    offset = (pl.program_id(0) * pl.num_programs(1) + pl.program_id(1)) * tr
    num_valid = rows_total - offset          # rows of this tile that are real data

    x = x_ref[...].astype(jnp.float32)
    cubic = x * x * x                        # sign(x) * |x|^3 == x^3
    raw = jnp.exp(a * jnp.abs(x - cubic) + b * jnp.abs(x + cubic))

    @pl.when(num_valid >= tr)                # fully valid tile: unmasked fold
    def _full():
        rmin_ref[...] = jnp.minimum(rmin_ref[...],
                                    jnp.min(raw, axis=0, keepdims=True))
        rmax_ref[...] = jnp.maximum(rmax_ref[...],
                                    jnp.max(raw, axis=0, keepdims=True))

    @pl.when(num_valid < tr)                 # ragged / phantom tile: mask tail rows
    def _ragged():
        row_id = lax.broadcasted_iota(jnp.int32, raw.shape, 0)
        valid = row_id < num_valid
        rmin_ref[...] = jnp.minimum(
            rmin_ref[...],
            jnp.min(jnp.where(valid, raw, jnp.inf), axis=0, keepdims=True))
        rmax_ref[...] = jnp.maximum(
            rmax_ref[...],
            jnp.max(jnp.where(valid, raw, -jnp.inf), axis=0, keepdims=True))


def _apply_kernel(params_ref, x_ref, o_ref):
    """Pass 2: recompute raw, normalize with hoisted scalars, apply tanh gate."""
    a = params_ref[0]
    b = params_ref[1]
    inv = params_ref[2]      # scale / (rmax - rmin), computed in the wrapper
    rmin = params_ref[3]

    x = x_ref[...].astype(jnp.float32)
    cubic = x * x * x
    raw = jnp.exp(a * jnp.abs(x - cubic) + b * jnp.abs(x + cubic))
    # (raw - rmin) * inv matches the reference more closely than raw*inv + bias
    # when raw / rmin are huge (exp can get very large).
    o_ref[...] = (((raw - rmin) * inv) * jnp.tanh(x)).astype(o_ref.dtype)


def custom_sensitive_tanh(x, a, b, scale, *, tile_rows=4096):
    """x: any-shape array (e.g. NCHW), any float dtype. a, b, scale: scalars."""
    orig_shape = x.shape
    dtype = x.dtype
    xf = x.reshape(-1)
    n = xf.size

    rem = n % _LANES
    padded = rem != 0
    if padded:
        # Rare path (n not lane-aligned): replicate the last element; its raw
        # value equals a real element's, so the global min/max is unaffected.
        xf = jnp.pad(xf, (0, _LANES - rem), mode="edge")
    rows = xf.size // _LANES
    x2d = xf.reshape(rows, _LANES)

    sub = _sublane_multiple(dtype)
    if rows <= tile_rows:
        tr = rows                                  # single full-array block
    else:
        tr = max(sub, (tile_rows // sub) * sub)    # large streaming tile
    tiles_total = pl.cdiv(rows, tr)
    tpc = pl.cdiv(tiles_total, _NUM_CORES)         # pass-1 tiles per core

    params1 = jnp.asarray([a, b], dtype=jnp.float32)
    rows_arr = jnp.asarray([rows], dtype=jnp.int32)

    def x_map_p1(c, i):
        # Clamp phantom tiles (ragged core split) into range; they are fully
        # masked out in-kernel via the SMEM row count.
        g = jnp.minimum(c * tpc + i, tiles_total - 1)
        return (g, 0)

    # ---- Pass 1: global min/max of raw_weights (per-core tiled reduction) ----
    rmin_parts, rmax_parts = pl.pallas_call(
        _minmax_kernel,
        out_shape=(jax.ShapeDtypeStruct((_NUM_CORES * 8, _LANES), jnp.float32),
                   jax.ShapeDtypeStruct((_NUM_CORES * 8, _LANES), jnp.float32)),
        grid=(_NUM_CORES, tpc),
        in_specs=[
            pl.BlockSpec(memory_space=pltpu.SMEM),            # [a, b]
            pl.BlockSpec(memory_space=pltpu.SMEM),            # [rows]
            pl.BlockSpec((tr, _LANES), x_map_p1),             # x tile
        ],
        out_specs=(
            pl.BlockSpec((8, _LANES), lambda c, i: (c, 0)),   # per-core min acc
            pl.BlockSpec((8, _LANES), lambda c, i: (c, 0)),   # per-core max acc
        ),
        compiler_params=pltpu.CompilerParams(
            dimension_semantics=("parallel", "arbitrary")),
    )(params1, rows_arr, x2d)

    # Tiny cross-lane / cross-core combine + hoisted normalization scalars.
    rmin = jnp.min(rmin_parts)
    rmax = jnp.max(rmax_parts)
    inv = jnp.asarray(scale, jnp.float32) / (rmax - rmin)
    params2 = jnp.concatenate(
        [params1, jnp.reshape(inv, (1,)), jnp.reshape(rmin, (1,))])

    # ---- Pass 2: recompute raw, normalize, gate with tanh (megacore-parallel) ----
    out2d = pl.pallas_call(
        _apply_kernel,
        out_shape=jax.ShapeDtypeStruct((rows, _LANES), dtype),
        grid=(tiles_total,),
        in_specs=[
            pl.BlockSpec(memory_space=pltpu.SMEM),            # [a, b, inv, rmin]
            pl.BlockSpec((tr, _LANES), lambda i: (i, 0)),     # x tile
        ],
        out_specs=pl.BlockSpec((tr, _LANES), lambda i: (i, 0)),
        compiler_params=pltpu.CompilerParams(
            dimension_semantics=("parallel",)),
    )(params2, x2d)

    if padded:
        return out2d.reshape(-1)[:n].reshape(orig_shape)
    return out2d.reshape(orig_shape)


def _reference(x, a, b, scale):
    x = x.astype(jnp.float32)
    cubic = jnp.sign(x) * jnp.abs(x) ** 3
    raw = jnp.exp(a * jnp.abs(x - cubic) + b * jnp.abs(x + cubic))
    w = scale * (raw - raw.min()) / (raw.max() - raw.min())
    return w * jnp.tanh(x)


if __name__ == "__main__":
    key = jax.random.PRNGKey(0)
    # Small NCHW input consistent with an activation module.
    x = jax.random.normal(key, (2, 4, 16, 16), dtype=jnp.float32)

    # Deterministic parameter init (module __init__ takes (a, b); scale=1.0).
    a, b, scale = 0.5, -0.25, 1.0

    fn = jax.jit(functools.partial(custom_sensitive_tanh, a=a, b=b, scale=scale))
    out = jax.block_until_ready(fn(x))

    ref = _reference(x, a, b, scale)
    assert out.shape == x.shape and out.dtype == x.dtype
    assert jnp.allclose(out, ref, atol=2e-5, rtol=2e-5), "mismatch vs reference"

    print("KERNEL_OK")
</pallas_src>

<mosaic_0001>
module attributes {stable_mosaic.version = 11 : i64} {
  func.func @_minmax_kernel(%arg0: i32, %arg1: i32, %arg2: memref<2xf32, #tpu.memory_space<smem>>, %arg3: memref<1xi32, #tpu.memory_space<smem>>, %arg4: memref<16x128xf32, #tpu.memory_space<vmem>>, %arg5: memref<8x128xf32, #tpu.memory_space<vmem>>, %arg6: memref<8x128xf32, #tpu.memory_space<vmem>>) attributes {dimension_semantics = [#tpu.dimension_semantics<parallel>, #tpu.dimension_semantics<arbitrary>], iteration_bounds = array<i64: 2, 1>, scalar_prefetch = 0 : i64, scratch_operands = 0 : i64, tpu.core_type = #tpu.core_type<tc>, window_params = [{transform_indices = @transform_0, window_bounds = array<i64: 2>}, {transform_indices = @transform_1, window_bounds = array<i64: 1>}, {transform_indices = @transform_2, window_bounds = array<i64: 16, 128>}, {transform_indices = @transform_3, window_bounds = array<i64: 8, 128>}, {transform_indices = @transform_4, window_bounds = array<i64: 8, 128>}]} {
    %c0 = arith.constant 0 : index
    %0 = memref.load %arg2[%c0] : memref<2xf32, #tpu.memory_space<smem>>
    %c1 = arith.constant 1 : index
    %1 = memref.load %arg2[%c1] : memref<2xf32, #tpu.memory_space<smem>>
    %c0_0 = arith.constant 0 : index
    %2 = memref.load %arg3[%c0_0] : memref<1xi32, #tpu.memory_space<smem>>
    %c0_i32 = arith.constant 0 : i32
    %3 = arith.cmpi eq, %arg1, %c0_i32 : i32
    %4 = arith.extui %3 : i1 to i32
    %c0_i32_1 = arith.constant 0 : i32
    %5 = arith.cmpi ne, %4, %c0_i32_1 : i32
    scf.if %5 {
      %cst = arith.constant 0x7F800000 : f32
      %29 = vector.broadcast %cst : f32 to vector<8x128xf32>
      %c0_8 = arith.constant 0 : index
      %c0_9 = arith.constant 0 : index
      %30 = vector.load %arg5[%c0_8, %c0_9] : memref<8x128xf32, #tpu.memory_space<vmem>>, vector<8x128xf32>
      tpu.vector_store %arg5[%c0_8, %c0_9], %29 {strides = array<i32>} : memref<8x128xf32, #tpu.memory_space<vmem>>, vector<8x128xf32>,
      %cst_10 = arith.constant 0xFF800000 : f32
      %31 = vector.broadcast %cst_10 : f32 to vector<8x128xf32>
      %c0_11 = arith.constant 0 : index
      %c0_12 = arith.constant 0 : index
      %32 = vector.load %arg6[%c0_11, %c0_12] : memref<8x128xf32, #tpu.memory_space<vmem>>, vector<8x128xf32>
      tpu.vector_store %arg6[%c0_11, %c0_12], %31 {strides = array<i32>} : memref<8x128xf32, #tpu.memory_space<vmem>>, vector<8x128xf32>,
    } else {
    }
    %c1_i32 = arith.constant 1 : i32
    %6 = arith.muli %arg0, %c1_i32 : i32
    %7 = arith.addi %6, %arg1 : i32
    %c16_i32 = arith.constant 16 : i32
    %8 = arith.muli %7, %c16_i32 : i32
    %9 = arith.subi %2, %8 : i32
    %c0_2 = arith.constant 0 : index
    %c0_3 = arith.constant 0 : index
    %10 = vector.load %arg4[%c0_2, %c0_3] : memref<16x128xf32, #tpu.memory_space<vmem>>, vector<16x128xf32>
    %11 = arith.mulf %10, %10 : vector<16x128xf32>
    %12 = arith.mulf %11, %10 : vector<16x128xf32>
    %13 = arith.subf %10, %12 : vector<16x128xf32>
    %14 = math.absf %13 : vector<16x128xf32>
    %15 = vector.broadcast %0 : f32 to vector<16x128xf32>
    %16 = arith.mulf %15, %14 : vector<16x128xf32>
    %17 = arith.addf %10, %12 : vector<16x128xf32>
    %18 = math.absf %17 : vector<16x128xf32>
    %19 = vector.broadcast %1 : f32 to vector<16x128xf32>
    %20 = arith.mulf %19, %18 : vector<16x128xf32>
    %21 = arith.addf %16, %20 : vector<16x128xf32>
    %22 = math.exp %21 : vector<16x128xf32>
    %c16_i32_4 = arith.constant 16 : i32
    %23 = arith.cmpi sge, %9, %c16_i32_4 : i32
    %24 = arith.extui %23 : i1 to i32
    %c0_i32_5 = arith.constant 0 : i32
    %25 = arith.cmpi ne, %24, %c0_i32_5 : i32
    scf.if %25 {
      %c0_8 = arith.constant 0 : index
      %c0_9 = arith.constant 0 : index
      %29 = vector.load %arg5[%c0_8, %c0_9] : memref<8x128xf32, #tpu.memory_space<vmem>>, vector<8x128xf32>
      %cst = arith.constant dense<0x7F800000> : vector<128xf32>
      %30 = vector.multi_reduction <minimumf>, %22, %cst [0] : vector<16x128xf32> to vector<128xf32>
      %31 = vector.shape_cast %30 : vector<128xf32> to vector<1x128xf32>
      %32 = vector.broadcast %31 : vector<1x128xf32> to vector<8x128xf32>
      %33 = arith.minimumf %29, %32 : vector<8x128xf32>
      %c0_10 = arith.constant 0 : index
      %c0_11 = arith.constant 0 : index
      %34 = vector.load %arg5[%c0_10, %c0_11] : memref<8x128xf32, #tpu.memory_space<vmem>>, vector<8x128xf32>
      tpu.vector_store %arg5[%c0_10, %c0_11], %33 {strides = array<i32>} : memref<8x128xf32, #tpu.memory_space<vmem>>, vector<8x128xf32>,
      %c0_12 = arith.constant 0 : index
      %c0_13 = arith.constant 0 : index
      %35 = vector.load %arg6[%c0_12, %c0_13] : memref<8x128xf32, #tpu.memory_space<vmem>>, vector<8x128xf32>
      %cst_14 = arith.constant dense<0xFF800000> : vector<128xf32>
      %36 = vector.multi_reduction <maximumf>, %22, %cst_14 [0] : vector<16x128xf32> to vector<128xf32>
      %37 = vector.shape_cast %36 : vector<128xf32> to vector<1x128xf32>
      %38 = vector.broadcast %37 : vector<1x128xf32> to vector<8x128xf32>
      %39 = arith.maximumf %35, %38 : vector<8x128xf32>
      %c0_15 = arith.constant 0 : index
      %c0_16 = arith.constant 0 : index
      %40 = vector.load %arg6[%c0_15, %c0_16] : memref<8x128xf32, #tpu.memory_space<vmem>>, vector<8x128xf32>
      tpu.vector_store %arg6[%c0_15, %c0_16], %39 {strides = array<i32>} : memref<8x128xf32, #tpu.memory_space<vmem>>, vector<8x128xf32>,
    } else {
    }
    %c16_i32_6 = arith.constant 16 : i32
    %26 = arith.cmpi slt, %9, %c16_i32_6 : i32
    %27 = arith.extui %26 : i1 to i32
    %c0_i32_7 = arith.constant 0 : i32
    %28 = arith.cmpi ne, %27, %c0_i32_7 : i32
    scf.if %28 {
      %29 = tpu.iota {dimensions = array<i32: 0>} : vector<16x128xi32>
      %30 = vector.broadcast %9 : i32 to vector<16x128xi32>
      %31 = arith.cmpi slt, %29, %30 : vector<16x128xi32>
      %c0_8 = arith.constant 0 : index
      %c0_9 = arith.constant 0 : index
      %32 = vector.load %arg5[%c0_8, %c0_9] : memref<8x128xf32, #tpu.memory_space<vmem>>, vector<8x128xf32>
      %cst = arith.constant 0x7F800000 : f32
      %33 = vector.broadcast %cst : f32 to vector<16x128xf32>
      %34 = arith.select %31, %22, %33 : vector<16x128xi1>, vector<16x128xf32>
      %cst_10 = arith.constant dense<0x7F800000> : vector<128xf32>
      %35 = vector.multi_reduction <minimumf>, %34, %cst_10 [0] : vector<16x128xf32> to vector<128xf32>
      %36 = vector.shape_cast %35 : vector<128xf32> to vector<1x128xf32>
      %37 = vector.broadcast %36 : vector<1x128xf32> to vector<8x128xf32>
      %38 = arith.minimumf %32, %37 : vector<8x128xf32>
      %c0_11 = arith.constant 0 : index
      %c0_12 = arith.constant 0 : index
      %39 = vector.load %arg5[%c0_11, %c0_12] : memref<8x128xf32, #tpu.memory_space<vmem>>, vector<8x128xf32>
      tpu.vector_store %arg5[%c0_11, %c0_12], %38 {strides = array<i32>} : memref<8x128xf32, #tpu.memory_space<vmem>>, vector<8x128xf32>,
      %c0_13 = arith.constant 0 : index
      %c0_14 = arith.constant 0 : index
      %40 = vector.load %arg6[%c0_13, %c0_14] : memref<8x128xf32, #tpu.memory_space<vmem>>, vector<8x128xf32>
      %cst_15 = arith.constant 0xFF800000 : f32
      %41 = vector.broadcast %cst_15 : f32 to vector<16x128xf32>
      %42 = arith.select %31, %22, %41 : vector<16x128xi1>, vector<16x128xf32>
      %cst_16 = arith.constant dense<0xFF800000> : vector<128xf32>
      %43 = vector.multi_reduction <maximumf>, %42, %cst_16 [0] : vector<16x128xf32> to vector<128xf32>
      %44 = vector.shape_cast %43 : vector<128xf32> to vector<1x128xf32>
      %45 = vector.broadcast %44 : vector<1x128xf32> to vector<8x128xf32>
      %46 = arith.maximumf %40, %45 : vector<8x128xf32>
      %c0_17 = arith.constant 0 : index
      %c0_18 = arith.constant 0 : index
      %47 = vector.load %arg6[%c0_17, %c0_18] : memref<8x128xf32, #tpu.memory_space<vmem>>, vector<8x128xf32>
      tpu.vector_store %arg6[%c0_17, %c0_18], %46 {strides = array<i32>} : memref<8x128xf32, #tpu.memory_space<vmem>>, vector<8x128xf32>,
    } else {
    }
    return
  }
  func.func @transform_0(%arg0: i32, %arg1: i32) -> i32 {
    %c0_i32 = arith.constant 0 : i32
    %c0_i32_0 = arith.constant 0 : i32
    return %c0_i32 : i32
  }
  func.func @transform_1(%arg0: i32, %arg1: i32) -> i32 {
    %c0_i32 = arith.constant 0 : i32
    %c0_i32_0 = arith.constant 0 : i32
    return %c0_i32 : i32
  }
  func.func @transform_2(%arg0: i32, %arg1: i32) -> (i32, i32) {
    %c1_i32 = arith.constant 1 : i32
    %0 = arith.muli %arg0, %c1_i32 : i32
    %1 = arith.addi %0, %arg1 : i32
    %c0_i32 = arith.constant 0 : i32
    %2 = arith.minsi %1, %c0_i32 : i32
    %c0_i32_0 = arith.constant 0 : i32
    %c0_i32_1 = arith.constant 0 : i32
    return %2, %c0_i32_0 : i32, i32
  }
  func.func @transform_3(%arg0: i32, %arg1: i32) -> (i32, i32) {
    %c0_i32 = arith.constant 0 : i32
    %c0_i32_0 = arith.constant 0 : i32
    return %arg0, %c0_i32 : i32, i32
  }
  func.func @transform_4(%arg0: i32, %arg1: i32) -> (i32, i32) {
    %c0_i32 = arith.constant 0 : i32
    %c0_i32_0 = arith.constant 0 : i32
    return %arg0, %c0_i32 : i32, i32
  }
}

module attributes {stable_mosaic.version = 11 : i64} {
  func.func @_apply_kernel(%arg0: i32, %arg1: memref<4xf32, #tpu.memory_space<smem>>, %arg2: memref<16x128xf32, #tpu.memory_space<vmem>>, %arg3: memref<16x128xf32, #tpu.memory_space<vmem>>) attributes {dimension_semantics = [#tpu.dimension_semantics<parallel>], iteration_bounds = array<i64: 1>, scalar_prefetch = 0 : i64, scratch_operands = 0 : i64, tpu.core_type = #tpu.core_type<tc>, window_params = [{transform_indices = @transform_0, window_bounds = array<i64: 4>}, {transform_indices = @transform_1, window_bounds = array<i64: 16, 128>}, {transform_indices = @transform_2, window_bounds = array<i64: 16, 128>}]} {
    %c0 = arith.constant 0 : index
    %0 = memref.load %arg1[%c0] : memref<4xf32, #tpu.memory_space<smem>>
    %c1 = arith.constant 1 : index
    %1 = memref.load %arg1[%c1] : memref<4xf32, #tpu.memory_space<smem>>
    %c2 = arith.constant 2 : index
    %2 = memref.load %arg1[%c2] : memref<4xf32, #tpu.memory_space<smem>>
    %c3 = arith.constant 3 : index
    %3 = memref.load %arg1[%c3] : memref<4xf32, #tpu.memory_space<smem>>
    %c0_0 = arith.constant 0 : index
    %c0_1 = arith.constant 0 : index
    %4 = vector.load %arg2[%c0_0, %c0_1] : memref<16x128xf32, #tpu.memory_space<vmem>>, vector<16x128xf32>
    %5 = arith.mulf %4, %4 : vector<16x128xf32>
    %6 = arith.mulf %5, %4 : vector<16x128xf32>
    %7 = arith.subf %4, %6 : vector<16x128xf32>
    %8 = math.absf %7 : vector<16x128xf32>
    %9 = vector.broadcast %0 : f32 to vector<16x128xf32>
    %10 = arith.mulf %9, %8 : vector<16x128xf32>
    %11 = arith.addf %4, %6 : vector<16x128xf32>
    %12 = math.absf %11 : vector<16x128xf32>
    %13 = vector.broadcast %1 : f32 to vector<16x128xf32>
    %14 = arith.mulf %13, %12 : vector<16x128xf32>
    %15 = arith.addf %10, %14 : vector<16x128xf32>
    %16 = math.exp %15 : vector<16x128xf32>
    %17 = vector.broadcast %3 : f32 to vector<16x128xf32>
    %18 = arith.subf %16, %17 : vector<16x128xf32>
    %19 = vector.broadcast %2 : f32 to vector<16x128xf32>
    %20 = arith.mulf %18, %19 : vector<16x128xf32>
    %21 = math.tanh %4 : vector<16x128xf32>
    %22 = arith.mulf %20, %21 : vector<16x128xf32>
    %c0_2 = arith.constant 0 : index
    %c0_3 = arith.constant 0 : index
    %23 = vector.load %arg3[%c0_2, %c0_3] : memref<16x128xf32, #tpu.memory_space<vmem>>, vector<16x128xf32>
    tpu.vector_store %arg3[%c0_2, %c0_3], %22 {strides = array<i32>} : memref<16x128xf32, #tpu.memory_space<vmem>>, vector<16x128xf32>,
    return
  }
  func.func @transform_0(%arg0: i32) -> i32 {
    %c0_i32 = arith.constant 0 : i32
    %c0_i32_0 = arith.constant 0 : i32
    return %c0_i32 : i32
  }
  func.func @transform_1(%arg0: i32) -> (i32, i32) {
    %c0_i32 = arith.constant 0 : i32
    %c0_i32_0 = arith.constant 0 : i32
    return %arg0, %c0_i32 : i32, i32
  }
  func.func @transform_2(%arg0: i32) -> (i32, i32) {
    %c0_i32 = arith.constant 0 : i32
    %c0_i32_0 = arith.constant 0 : i32
    return %arg0, %c0_i32 : i32, i32
  }
}

</mosaic_0001>

<bundles_post_ra>
// kernel: custom_sensitive_tanh.2
= control target key start
LH: loop header
LB: loop body
LE: loop exit
PB: predicated region body
PF: predicated region fallthrough
CT: control target
= control target key end

     0   :  { %s674_s0 = inlined_call_operand.vmem [shape: f32[2], index: 0, kind: input, shape index: {}]   ;;  %s675_s1 = inlined_call_operand.<no memory space> [shape: s32[1], index: 1, kind: input, shape index: {}]   ;;  %s676_s2 = inlined_call_operand.vmem [shape: f32[16,128], index: 2, kind: input, shape index: {}]   ;;  %s677_s3 = inlined_call_operand.vmem [shape: f32[16,128], index: 3, kind: output, shape index: {0}]   ;;  %s678_s4 = inlined_call_operand.vmem [shape: f32[16,128], index: 4, kind: output, shape index: {1}]  }
   0x1   :  { %10 = sst [smem:[#allocation2]] %s675_s1 }
   0x2   :  { %11 = vsyncpa [#allocation4], 0  ;;  %s590_s17 = smov 0   ;;  %s592_s18 = smov 0  }
   0x3   :  { %s594_s19 = smov 0  }
   0x4 LB: > { %s458_s1 = sadd.s32 4294967295, %s557_s19   ;;  %s29_s20 = sadd.s32 1, %s553_s18  ;;  %s557_s19 = sphi %s594_s19, %s17_s19   ;;  %s553_s18 = sphi %s592_s18, %s682_s18   ;;  %s549_s17 = sphi %s590_s17, %s681_s17  }
   0x5   : > { %p31_p0 = scmp.ge.s32.totalorder %s29_s20, 2  ;;  %p460_p1 = scmp.ge.s32.totalorder %s557_s19, 1 }
   0x6   : > { %p160_p2 = scmp.lt.s32.totalorder %s557_s19, 3  ;;  %p615_p4 = scmp.eq.s32.totalorder %s458_s1, 0 }
   0x7   : > { %s684_s20 = smov (%p31_p0, %s29_s20), 0  ;;  %s173_s25 = sshll.u32 %s674_s0, 4  ;;  %s174_s25 = int_to_ptr.vmem [resolvable:$true] %s173_s25 }
   0x8   : > { %p611_p3 = pnand %p460_p1, %p160_p2  ;;  %s516_s26 = scalar_lea.vmem %s174_s25, 16 }
   0x9   : > { %p517_p7 = scmp.ne.s32.totalorder %s174_s25, %s516_s26  ;;  %p524_p11 = scmp.lt.s32.totalorder %s174_s25, %s174_s25 }
   0xa   : > { %p479_p5 = pneg %p611_p3  ;;  %p525_p12 = scmp.lt.s32.totalorder %s516_s26, %s516_s26 }
   0xc   : > { %p480_p6 = pnand %p615_p4, %p479_p5  ;;  %p526_p13 = por %p525_p12, %p524_p11 }
   0xe   : > { %p518_p8 = pneg %p480_p6 }
  0x10   : > { %p519_p9 = pnand %p518_p8, %p517_p7 }
  0x12   : > { %p520_p10 = pneg %p519_p9 }
  0x14   : > { %p527_p0 = pnand %p526_p13, %p520_p10 }
  0x16   : > { %530 = shalt.err (!%p527_p0)
}
  0x17   : > { %s559_s27 = smov [#allocation3]   ;;  %204 = sbr.rel (%p611_p3) target bundleno = 113 (0x71), region = 32 }
  0x18   : > { %482 = dma.vmem_to_smem (!%p480_p6), %s174_s25, 16, %s559_s27, [#allocation4]  }
  0x1e   : > { %544 = dma.done.wait (%p615_p4), [#allocation4], 16  }
  0x1f   : > { %546 = vsyncadd (%p615_p4), [#allocation4], 4294967280 }
  0x20   : > { %210 = sfence }
  0x21   : > { %p238_p1 = scmp.lt.s32.totalorder %s549_s17, 0  ;;  %p249_p2 = scmp.lt.s32.totalorder %s549_s17, 1  ;;  %v560_v0 = vmov inf   ;;  %v561_v1 = vmov -inf  }
  0x22   : > { %s259_s5 = sld [smem:[#allocation2]]  ;;  %s470_s14 = sshll.u32 %s549_s17, 4 }
  0x23   : > { %s239_s28 = scalar_select %p238_p1, %s549_s17, 0 }
  0x24   : > { %s250_s29 = scalar_select %p249_p2, %s549_s17, 1 }
  0x25   : > { %s465_s30 = sshll.u32 %s239_s28, 1  ;;  %s257_s13 = sld [smem:[#allocation3]] }
  0x26   : > { %p241_p5 = scmp.lt.s32.totalorder %s465_s30, 1  ;;  %s467_s6 = sshll.u32 %s250_s29, 3 }
  0x27   : > { %s639_s9 = scalar_lea.vmem %s677_s3, %s467_s6  ;;  %s644_s12 = scalar_lea.vmem %s678_s4, %s467_s6 }
  0x28   : > { %s686_s30 = smov (!%p241_p5, %s465_s30), 1  ;;  %264 = vst [vmem:[%s639_s9] sm:$0xff] %v560_v0  ;;  %265 = vst [vmem:[%s644_s12] sm:$0xff] %v561_v1  ;;  %s469_s16 = sld [smem:[#allocation3 + $0x1]] }
  0x29   : > { %s466_s15 = sshll.u32 %s686_s30, 3  ;;  %s652_s23 = ssub.s32 %s259_s5, %s470_s14 }
  0x2a   : > { %s244_s22 = scalar_lea.vmem %s676_s2, %s466_s15  ;;  %p471_p3 = scmp.lt.s32.totalorder %s652_s23, 16 }
  0x2b   : > { %v269_v2 = vld [vmem:[%s244_s22] sm:$0xff]  ;;  %v270_v3 = vld [vmem:[%s244_s22 + $0x8] sm:$0xff]  ;;  %v279_v12 = vstv %s257_s13 }
  0x2c   : > { %v271_v4 = vmul.f32 %v269_v2, %v269_v2  ;;  %v272_v5 = vmul.f32 %v270_v3, %v270_v3 }
  0x2e   : > { %v273_v6 = vmul.f32 %v271_v4, %v269_v2  ;;  %v274_v7 = vmul.f32 %v272_v5, %v270_v3  ;;  %v286_v13 = vstv %s469_s16 }
  0x2f   : > { %v299_v40 = vld [vmem:[%s639_s9] sm:$0xff] (!%p471_p3) }
  0x30   : > { %v275_v8 = vsub.f32 %v269_v2, %v273_v6  ;;  %v276_v9 = vsub.f32 %v270_v3, %v274_v7  ;;  %v282_v10 = vadd.f32 %v273_v6, %v269_v2  ;;  %v283_v11 = vadd.f32 %v274_v7, %v270_v3  ;;  %v309_v41 = vld [vmem:[%s644_s12] sm:$0xff] (!%p471_p3) }
  0x32   : > { %v277_v14 = vand.u32 2147483647, %v275_v8  ;;  %v278_v15 = vand.u32 2147483647, %v276_v9  ;;  %v284_v16 = vand.u32 2147483647, %v282_v10 }
  0x33   : > { %v285_v17 = vand.u32 2147483647, %v283_v11 }
  0x34   : > { %v280_v18 = vmul.f32 %v279_v12, %v277_v14  ;;  %v281_v19 = vmul.f32 %v279_v12, %v278_v15  ;;  %v287_v20 = vmul.f32 %v286_v13, %v284_v16 }
  0x35   : > { %v288_v21 = vmul.f32 %v286_v13, %v285_v17 }
  0x36   : > { %v289_v22 = vadd.f32 %v287_v20, %v280_v18 }
  0x37   : > { %v290_v23 = vadd.f32 %v288_v21, %v281_v19 }
  0x38   : > { %v291_v24 = vmul.f32 1.442695, %v289_v22 }
  0x39   : > { %v293_v25 = vmul.f32 1.442695, %v290_v23 }
  0x3a   : > { %512 = vpow2.f32 %v291_v24 }
  0x3b   : > { %514 = vpow2.f32 %v293_v25 }
  0x3f   : > { %298 = sbr.rel (%p471_p3) target bundleno = 87 (0x57), region = 44 }
  0x44   : > { %v513_v26 = vpop.eup %512 }
  0x45   : > { %v515_v27 = vpop.eup %514 }
  0x46   : > { %v300_v28 = vmin.f32 %v513_v26, %v515_v27  ;;  %v310_v29 = vmax.f32 %v513_v26, %v515_v27 }
  0x48   : > { %v301_v30 = vrot.slane %v300_v28, 4  ;;  %v311_v31 = vrot.slane %v310_v29, 4 }
  0x4a   : > { %v302_v32 = vmin.f32 %v300_v28, %v301_v30  ;;  %v312_v33 = vmax.f32 %v310_v29, %v311_v31 }
  0x4c   : > { %v303_v34 = vrot.slane %v302_v32, 2  ;;  %v313_v35 = vrot.slane %v312_v33, 2 }
  0x4e   : > { %v304_v36 = vmin.f32 %v302_v32, %v303_v34  ;;  %v314_v37 = vmax.f32 %v312_v33, %v313_v35 }
  0x50   : > { %v305_v38 = vrot.slane %v304_v36, 1  ;;  %v315_v39 = vrot.slane %v314_v37, 1 }
  0x52   : > { %v306_v42 = vmin.f32 %v304_v36, %v305_v38  ;;  %v316_v43 = vmax.f32 %v314_v37, %v315_v39 }
  0x54   : > { %v307_v44 = vmin.f32 %v299_v40, %v306_v42  ;;  %v317_v45 = vmax.f32 %v309_v41, %v316_v43 }
  0x56   : > { %308 = vst [vmem:[%s639_s9] sm:$0xff] %v307_v44  ;;  %318 = vst [vmem:[%s644_s12] sm:$0xff] %v317_v45 }
  0x57 PF: > { %p472_p4 = scmp.ge.s32.totalorder %s652_s23, 16 }
  0x58   : > { %v323_v46 = vlaneseq (!%p472_p4)  ;;  %v326_v47 = vstv (!%p472_p4), %s652_s23 }
  0x59   : > { %322 = sbr.rel (%p472_p4) target bundleno = 113 (0x71), region = 48 }
  0x5a   : > { %v324_v48 = vshrl.u32 (!%p472_p4), %v323_v46, 7 }
  0x5c   : > { %v325_v49 = vadd.s32 (!%p472_p4), 8, %v324_v48  ;;  %vm327_vm0 = vcmp.lt.s32.totalorder (!%p472_p4), %v324_v48, %v326_v47 }
  0x5d   : > { %v330_v50 = vsel (!%p472_p4), %vm327_vm0, %v513_v26, inf  ;;  %v342_v51 = vsel (!%p472_p4), %vm327_vm0, %v513_v26, -inf  ;;  %v329_v2 = vld [vmem:[%s639_s9] sm:$0xff] (!%p472_p4) }
  0x5e   : > { %vm328_vm1 = vcmp.lt.s32.totalorder (!%p472_p4), %v325_v49, %v326_v47  ;;  %v341_v3 = vld [vmem:[%s644_s12] sm:$0xff] (!%p472_p4) }
  0x5f   : > { %v331_v52 = vsel (!%p472_p4), %vm328_vm1, %v515_v27, inf  ;;  %v343_v53 = vsel (!%p472_p4), %vm328_vm1, %v515_v27, -inf }
  0x60   : > { %v332_v54 = vmin.f32 %v330_v50, %v331_v52  ;;  %v344_v55 = vmax.f32 %v342_v51, %v343_v53 }
  0x62   : > { %v333_v56 = vrot.slane %v332_v54, 4  ;;  %v345_v57 = vrot.slane %v344_v55, 4 }
  0x64   : > { %v334_v58 = vmin.f32 %v332_v54, %v333_v56  ;;  %v346_v59 = vmax.f32 %v344_v55, %v345_v57 }
  0x66   : > { %v335_v60 = vrot.slane %v334_v58, 2  ;;  %v347_v61 = vrot.slane %v346_v59, 2 }
  0x68   : > { %v336_v62 = vmin.f32 %v334_v58, %v335_v60  ;;  %v348_v63 = vmax.f32 %v346_v59, %v347_v61 }
  0x6a   : > { %v337_v0 = vrot.slane %v336_v62, 1  ;;  %v349_v1 = vrot.slane %v348_v63, 1 }
  0x6c   : > { %v338_v4 = vmin.f32 %v336_v62, %v337_v0  ;;  %v350_v5 = vmax.f32 %v348_v63, %v349_v1 }
  0x6e   : > { %v339_v6 = vmin.f32 %v329_v2, %v338_v4  ;;  %v351_v7 = vmax.f32 %v341_v3, %v350_v5 }
  0x70   : > { %340 = vst [vmem:[%s639_s9] sm:$0xff] %v339_v6  ;;  %352 = vst [vmem:[%s644_s12] sm:$0xff] %v351_v7 }
  0x71 PF: > { %s17_s19 = sadd.s32 1, %s557_s19   ;;  %s681_s17 = smov %s553_s18 }
  0x72   : > { %p14_p6 = scmp.ge.s32.totalorder %s17_s19, 4   ;;  %s682_s18 = smov %s684_s20 }
  0x74   :  { %16 = sbr.rel (!%p14_p6) target bundleno = 4 (0x4), region = 91 }
  0x7b   :  { %386 = vsyncpa [#allocation4], 1 }
  0x7c   :  { %388 = vsyncpa [#allocation4 + $0x1], 1 }

// kernel: custom_sensitive_tanh.3
= control target key start
LH: loop header
LB: loop body
LE: loop exit
PB: predicated region body
PF: predicated region fallthrough
CT: control target
= control target key end

     0   :  { %7 = vsyncpa [#allocation3], 0  ;;  %s128_s0 = inlined_call_operand.vmem [shape: f32[4], index: 0, kind: input, shape index: {}]   ;;  %s129_s1 = inlined_call_operand.vmem [shape: f32[16,128], index: 1, kind: input, shape index: {}]   ;;  %s130_s2 = inlined_call_operand.vmem [shape: f32[16,128], index: 2, kind: output, shape index: {}]  }
   0x1   :  { %s14_s11 = sshll.u32 %s128_s0, 4  ;;  %s15_s11 = int_to_ptr.vmem [resolvable:$true] %s14_s11 }
   0x2   :  { %s83_s12 = scalar_lea.vmem %s15_s11, 16  ;;  %p88_p1 = scmp.lt.s32.totalorder %s15_s11, %s15_s11 }
   0x3   :  { %p84_p0 = scmp.ne.s32.totalorder %s15_s11, %s83_s12  ;;  %p89_p2 = scmp.lt.s32.totalorder %s83_s12, %s83_s12 }
   0x5   :  { %p90_p3 = por %p89_p2, %p88_p1 }
   0x7   :  { %p91_p4 = pnand %p90_p3, %p84_p0 }
   0x9   :  { %94 = shalt.err (!%p91_p4)
}
   0xa   :  { %s97_s13 = smov [#allocation2]  }
   0xb   :  { %17 = dma.vmem_to_smem %s15_s11, 16, %s97_s13, [#allocation3]  }
   0xc   :  { %95 = dma.done.wait [#allocation3], 16  }
   0xd   :  { %96 = vsyncadd [#allocation3], 4294967280 }
   0xe   :  { %23 = sfence }
   0xf   :  { %s24_s14 = sld [smem:[#allocation2]]  ;;  %s71_s15 = sld [smem:[#allocation2 + $0x1]]  ;;  %v28_v0 = vld [vmem:[%s129_s1] sm:$0xff]  ;;  %v29_v1 = vld [vmem:[%s129_s1 + $0x8] sm:$0xff] }
  0x10   :  { %v30_v2 = vmul.f32 %v28_v0, %v28_v0  ;;  %v31_v3 = vmul.f32 %v29_v1, %v29_v1  ;;  %s73_s1 = sld [smem:[#allocation2 + $0x3]]  ;;  %s72_s19 = sld [smem:[#allocation2 + $0x2]] }
  0x12   :  { %v32_v4 = vmul.f32 %v30_v2, %v28_v0  ;;  %v33_v5 = vmul.f32 %v31_v3, %v29_v1 }
  0x14   :  { %v34_v6 = vsub.f32 %v28_v0, %v32_v4  ;;  %v41_v7 = vadd.f32 %v32_v4, %v28_v0  ;;  %v35_v8 = vsub.f32 %v29_v1, %v33_v5  ;;  %v42_v9 = vadd.f32 %v33_v5, %v29_v1 }
  0x15   :  { %v38_v10 = vstv %s24_s14  ;;  %v45_v11 = vstv %s71_s15 }
  0x16   :  { %v36_v12 = vand.u32 2147483647, %v34_v6  ;;  %v43_v13 = vand.u32 2147483647, %v41_v7  ;;  %v37_v14 = vand.u32 2147483647, %v35_v8  ;;  %v54_v24 = vstv %s73_s1 }
  0x17   :  { %v44_v15 = vand.u32 2147483647, %v42_v9  ;;  %v57_v26 = vstv %s72_s19 }
  0x18   :  { %v39_v16 = vmul.f32 %v38_v10, %v36_v12  ;;  %v46_v17 = vmul.f32 %v45_v11, %v43_v13  ;;  %v40_v18 = vmul.f32 %v38_v10, %v37_v14 }
  0x19   :  { %v47_v19 = vmul.f32 %v45_v11, %v44_v15 }
  0x1a   :  { %v48_v20 = vadd.f32 %v46_v17, %v39_v16 }
  0x1b   :  { %v49_v21 = vadd.f32 %v47_v19, %v40_v18 }
  0x1c   :  { %v50_v22 = vmul.f32 1.442695, %v48_v20 }
  0x1d   :  { %v52_v23 = vmul.f32 1.442695, %v49_v21 }
  0x1e   :  { %75 = vpow2.f32 %v50_v22 }
  0x1f   :  { %77 = vpow2.f32 %v52_v23 }
  0x20   :  { %79 = vtanh.f32 %v28_v0 }
  0x21   :  { %81 = vtanh.f32 %v29_v1 }
  0x28   :  { %v76_v25 = vpop.eup %75 }
  0x29   :  { %v78_v27 = vpop.eup %77  ;;  %v55_v28 = vsub.f32 %v76_v25, %v54_v24 }
  0x2a   :  { %v80_v29 = vpop.eup %79  ;;  %v56_v30 = vsub.f32 %v78_v27, %v54_v24 }
  0x2b   :  { %v82_v31 = vpop.eup %81  ;;  %v58_v32 = vmul.f32 %v57_v26, %v55_v28 }
  0x2c   :  { %v59_v33 = vmul.f32 %v57_v26, %v56_v30 }
  0x2d   :  { %v62_v34 = vmul.f32 %v80_v29, %v58_v32 }
  0x2e   :  { %v63_v35 = vmul.f32 %v82_v31, %v59_v33 }
  0x2f   :  { %64 = vst [vmem:[%s130_s2] sm:$0xff] %v62_v34 }
  0x30   :  { %65 = vst [vmem:[%s130_s2 + $0x8] sm:$0xff] %v63_v35 }
  0x31   :  { %70 = vsyncpa [#allocation3], 1 }

</bundles_post_ra>
